<compile_context>
chip_gen: v7x
topology: tpu7x:2x2x1
jax: 0.10.0
libtpu: 0.0.40
codegen_flags: <defaults>
</compile_context>

<pallas_src>
import math

import jax
import jax.numpy as jnp
from jax.experimental import pallas as pl
from jax.experimental.pallas import tpu as pltpu

lc_ampl = 0.5


def _round_up(a, m):
    return (a + m - 1) // m * m


def _pick_tile(padded_extent, target, granule):
    """Largest multiple of `granule` that divides `padded_extent` and is <= target.

    `padded_extent` must already be a multiple of `granule`.
    """
    if padded_extent <= target:
        return padded_extent
    best = granule
    t = granule
    while t <= target:
        if padded_extent % t == 0:
            best = t
        t += granule
    return best


def qlinear_sign_kernel(x_ref, w_ref, b_ref, o_ref):
    """One (tm, tn) f32 output tile, accumulated in place over the K grid axis.

    x_ref: (tm, tk) activations (compute dtype)
    w_ref: (tk, tn) W^T tile    (compute dtype)
    b_ref: (1,  tn) raw bias    (f32)
    o_ref: (tm, tn) f32 output; its block index (i, j) is invariant along k, so it
           stays VMEM-resident across the reduction and doubles as the accumulator.
    """
    k = pl.program_id(2)

    @pl.when(k == 0)
    def _():
        # Fold the bias add and the "+1" of the (y + 1)/2 epilogue into the init.
        o_ref[...] = jnp.broadcast_to(b_ref[...] + 1.0, o_ref.shape)

    o_ref[...] += jnp.dot(x_ref[...], w_ref[...],
                          preferred_element_type=jnp.float32)

    @pl.when(k == pl.num_programs(2) - 1)
    def _():
        # "/2" of the epilogue (the "+1" already happened at init).
        o_ref[...] = o_ref[...] * 0.5


def prepare_params(weights, bias, *, compute_dtype=jnp.float32):
    """One-time parameter preprocessing.  Call ONCE per parameter set, then reuse.

    weights: (O, I) f32, bias: (O,) f32.
    Returns:
      w_t_padded : (Ip, Op) compute_dtype -- W^T, zero-padded to 128 multiples.
      bias_padded: (1,  Op) f32           -- raw bias, zero-padded.
    """
    O, I = weights.shape
    Ip = _round_up(I, 128)   # K is the lane dim of x and the sublane dim of W^T.
    Op = _round_up(O, 128)   # lane-dense output stores.
    w_t = weights.T.astype(compute_dtype)
    if (Ip, Op) != (I, O):
        w_t = jnp.pad(w_t, ((0, Ip - I), (0, Op - O)))
    b = bias.astype(jnp.float32).reshape(1, O)
    if Op != O:
        b = jnp.pad(b, ((0, 0), (0, Op - O)))
    return w_t, b


def qlinear_layer_sign_prepared(x, w_t_padded, bias_padded, *, out_features,
                                tm=256, tn=512, tk=512):
    """((x @ W^T + bias) + 1) / 2 using pre-transposed / pre-padded parameters.

    x: (B, I); w_t_padded: (Ip, Op); bias_padded: (1, Op).  Returns (B, out_features) f32.
    """
    B, I = x.shape
    Ip, Op = w_t_padded.shape
    compute_dtype = w_t_padded.dtype
    assert Ip >= I and Ip % 128 == 0 and Op % 128 == 0
    assert out_features <= Op

    sublane = 16 if compute_dtype == jnp.bfloat16 else 8
    Bp = _round_up(B, sublane)

    # Tiles must divide the (minimally) padded extents exactly -> no dead work on K.
    tm = _pick_tile(Bp, tm, sublane)
    tk = _pick_tile(Ip, tk, 128)
    tn = _pick_tile(Op, tn, 128)

    x_c = x.astype(compute_dtype)
    if (Bp, Ip) != (B, I):
        x_c = jnp.pad(x_c, ((0, Bp - B), (0, Ip - I)))

    grid = (Bp // tm, Op // tn, Ip // tk)

    itemsize = jnp.dtype(compute_dtype).itemsize
    cost = pl.CostEstimate(
        flops=2 * Bp * Op * Ip,
        transcendentals=0,
        bytes_accessed=(Bp * Ip + Ip * Op) * itemsize + (Op + Bp * Op) * 4,
    )

    out = pl.pallas_call(
        qlinear_sign_kernel,
        out_shape=jax.ShapeDtypeStruct((Bp, Op), jnp.float32),
        grid_spec=pltpu.PrefetchScalarGridSpec(
            num_scalar_prefetch=0,
            grid=grid,
            in_specs=[
                pl.BlockSpec((tm, tk), lambda i, j, k: (i, k)),   # x tile
                pl.BlockSpec((tk, tn), lambda i, j, k: (k, j)),   # W^T tile (batch-invariant)
                pl.BlockSpec((1, tn), lambda i, j, k: (0, j)),    # bias tile
            ],
            out_specs=pl.BlockSpec((tm, tn), lambda i, j, k: (i, j)),
        ),
        compiler_params=pltpu.CompilerParams(
            dimension_semantics=("parallel", "parallel", "arbitrary"),
            vmem_limit_bytes=48 * 1024 * 1024,   # headroom on v7x's 64 MiB/TC VMEM
        ),
        cost_estimate=cost,
    )(x_c, w_t_padded, bias_padded)

    return out[:B, :out_features]


def qlinear_layer_sign(x, weights, bias, *, compute_dtype=jnp.float32, **tile_kwargs):
    """Convenience one-shot wrapper (prepares parameters on every call).

    For repeated forward passes, call prepare_params() once and reuse
    qlinear_layer_sign_prepared() -- that avoids re-reading/re-writing the weight
    matrix in HBM on every call.  compute_dtype=jnp.bfloat16 is recommended for
    throughput (f32 accumulation is kept either way).
    """
    w_t, b_p = prepare_params(weights, bias, compute_dtype=compute_dtype)
    return qlinear_layer_sign_prepared(
        x, w_t, b_p, out_features=weights.shape[0], **tile_kwargs)


def init_params(key, input_features, output_features):
    """Deterministic re-implementation of QLinearLayerSign.__init__ (no-quant path)."""
    stdv = lc_ampl / math.sqrt(input_features)
    k_w, k_fa, k_b = jax.random.split(key, 3)
    weights = jax.random.uniform(
        k_w, (output_features, input_features), jnp.float32, -stdv, stdv)
    weight_fa = jax.random.uniform(
        k_fa, (output_features, input_features), jnp.float32, -stdv, stdv)
    bias = jax.random.uniform(
        k_b, (output_features,), jnp.float32, -stdv, stdv)
    # Sign-alignment of weight_fa (used only by backward; kept for fidelity).
    nonzero = weights != 0
    flip = jnp.sign(
        (jnp.sign(weights) == jnp.sign(weight_fa)).astype(jnp.float32) - 0.5)
    weight_fa = jnp.where(nonzero, weight_fa * flip, weight_fa)
    return weights, weight_fa, bias


def _reference(x, weights, bias):
    return (jnp.einsum('ab,cb->ac', x, weights) + bias[None, :] + 1.0) / 2.0


if __name__ == "__main__":
    key = jax.random.PRNGKey(0)
    k_x, k_p, k_x2, k_p2, k_x3 = jax.random.split(key, 5)

    # --- 1) small shapes matching the module's toy usage (f32, strict) ---
    B, I, O = 4, 32, 64
    x = jax.random.normal(k_x, (B, I), jnp.float32)
    weights, weight_fa, bias = init_params(k_p, I, O)
    out = jax.block_until_ready(qlinear_layer_sign(x, weights, bias))
    ref = _reference(x, weights, bias)
    assert out.shape == (B, O)
    assert jnp.allclose(out, ref, atol=1e-5, rtol=1e-5)

    # --- 2) medium shapes: non-power-of-two O exercises minimal padding / tile pick ---
    B2, I2, O2 = 64, 256, 384
    x2 = jax.random.normal(k_x2, (B2, I2), jnp.float32)
    w2, _, b2 = init_params(k_p2, I2, O2)
    out2 = jax.block_until_ready(qlinear_layer_sign(x2, w2, b2))
    ref2 = _reference(x2, w2, b2)
    assert out2.shape == (B2, O2)
    assert jnp.allclose(out2, ref2, atol=1e-4, rtol=1e-4)

    # --- 3) forced multi-tile grid (multiple i/j blocks and K accumulation steps) ---
    B3 = 96
    x3 = jax.random.normal(k_x3, (B3, I2), jnp.float32)
    out3 = jax.block_until_ready(
        qlinear_layer_sign(x3, w2, b2, tm=32, tn=128, tk=128))
    ref3 = _reference(x3, w2, b2)
    assert out3.shape == (B3, O2)
    assert jnp.allclose(out3, ref3, atol=1e-4, rtol=1e-4)

    # --- 4) recommended fast path: bf16 compute with params prepared once ---
    w_prep, b_prep = prepare_params(w2, b2, compute_dtype=jnp.bfloat16)
    out4 = jax.block_until_ready(
        qlinear_layer_sign_prepared(x2, w_prep, b_prep, out_features=O2))
    assert out4.shape == (B2, O2)
    assert jnp.allclose(out4, ref2, atol=2e-2, rtol=2e-2)   # bf16 inputs -> looser tol

    print("KERNEL_OK")
</pallas_src>

<mosaic_0001>
module attributes {stable_mosaic.version = 11 : i64} {
  func.func @qlinear_sign_kernel(%arg0: i32, %arg1: i32, %arg2: i32, %arg3: memref<8x128xf32, #tpu.memory_space<vmem>>, %arg4: memref<128x128xf32, #tpu.memory_space<vmem>>, %arg5: memref<1x128xf32, #tpu.memory_space<vmem>>, %arg6: memref<8x128xf32, #tpu.memory_space<vmem>>) attributes {dimension_semantics = [#tpu.dimension_semantics<parallel>, #tpu.dimension_semantics<parallel>, #tpu.dimension_semantics<arbitrary>], iteration_bounds = array<i64: 1, 1, 1>, scalar_prefetch = 0 : i64, scratch_operands = 0 : i64, tpu.core_type = #tpu.core_type<tc>, window_params = [{transform_indices = @transform_0, window_bounds = array<i64: 8, 128>}, {transform_indices = @transform_1, window_bounds = array<i64: 128, 128>}, {transform_indices = @transform_2, window_bounds = array<i64: 1, 128>}, {transform_indices = @transform_3, window_bounds = array<i64: 8, 128>}]} {
    %c0_i32 = arith.constant 0 : i32
    %0 = arith.cmpi eq, %arg2, %c0_i32 : i32
    %1 = arith.extui %0 : i1 to i32
    %c0_i32_0 = arith.constant 0 : i32
    %2 = arith.cmpi ne, %1, %c0_i32_0 : i32
    scf.if %2 {
      %c0_10 = arith.constant 0 : index
      %c0_11 = arith.constant 0 : index
      %12 = vector.load %arg5[%c0_10, %c0_11] : memref<1x128xf32, #tpu.memory_space<vmem>>, vector<1x128xf32>
      %cst_12 = arith.constant 1.000000e+00 : f32
      %13 = vector.broadcast %cst_12 : f32 to vector<1x128xf32>
      %14 = arith.addf %12, %13 : vector<1x128xf32>
      %15 = vector.shape_cast %14 : vector<1x128xf32> to vector<1x128xf32>
      %16 = vector.broadcast %15 : vector<1x128xf32> to vector<8x128xf32>
      %c0_13 = arith.constant 0 : index
      %c0_14 = arith.constant 0 : index
      %17 = vector.load %arg6[%c0_13, %c0_14] : memref<8x128xf32, #tpu.memory_space<vmem>>, vector<8x128xf32>
      tpu.vector_store %arg6[%c0_13, %c0_14], %16 {strides = array<i32>} : memref<8x128xf32, #tpu.memory_space<vmem>>, vector<8x128xf32>,
    } else {
    }
    %c0 = arith.constant 0 : index
    %c0_1 = arith.constant 0 : index
    %3 = vector.load %arg6[%c0, %c0_1] : memref<8x128xf32, #tpu.memory_space<vmem>>, vector<8x128xf32>
    %c0_2 = arith.constant 0 : index
    %c0_3 = arith.constant 0 : index
    %4 = vector.load %arg3[%c0_2, %c0_3] : memref<8x128xf32, #tpu.memory_space<vmem>>, vector<8x128xf32>
    %c0_4 = arith.constant 0 : index
    %c0_5 = arith.constant 0 : index
    %5 = vector.load %arg4[%c0_4, %c0_5] : memref<128x128xf32, #tpu.memory_space<vmem>>, vector<128x128xf32>
    %cst = arith.constant dense<0.000000e+00> : vector<8x128xf32>
    %6 = tpu.matmul %4, %5, %cst {dimension_numbers = #tpu.dot_dimension_numbers<[1], [0], [0], [1], [0, 0, 1, 1], [], []>} : vector<8x128xf32>, vector<128x128xf32>, vector<8x128xf32> -> vector<8x128xf32>
    %7 = arith.addf %3, %6 : vector<8x128xf32>
    %c0_6 = arith.constant 0 : index
    %c0_7 = arith.constant 0 : index
    %8 = vector.load %arg6[%c0_6, %c0_7] : memref<8x128xf32, #tpu.memory_space<vmem>>, vector<8x128xf32>
    tpu.vector_store %arg6[%c0_6, %c0_7], %7 {strides = array<i32>} : memref<8x128xf32, #tpu.memory_space<vmem>>, vector<8x128xf32>,
    %c0_i32_8 = arith.constant 0 : i32
    %9 = arith.cmpi eq, %arg2, %c0_i32_8 : i32
    %10 = arith.extui %9 : i1 to i32
    %c0_i32_9 = arith.constant 0 : i32
    %11 = arith.cmpi ne, %10, %c0_i32_9 : i32
    scf.if %11 {
      %c0_10 = arith.constant 0 : index
      %c0_11 = arith.constant 0 : index
      %12 = vector.load %arg6[%c0_10, %c0_11] : memref<8x128xf32, #tpu.memory_space<vmem>>, vector<8x128xf32>
      %cst_12 = arith.constant 5.000000e-01 : f32
      %13 = vector.broadcast %cst_12 : f32 to vector<8x128xf32>
      %14 = arith.mulf %12, %13 : vector<8x128xf32>
      %c0_13 = arith.constant 0 : index
      %c0_14 = arith.constant 0 : index
      %15 = vector.load %arg6[%c0_13, %c0_14] : memref<8x128xf32, #tpu.memory_space<vmem>>, vector<8x128xf32>
      tpu.vector_store %arg6[%c0_13, %c0_14], %14 {strides = array<i32>} : memref<8x128xf32, #tpu.memory_space<vmem>>, vector<8x128xf32>,
    } else {
    }
    return
  }
  func.func @transform_0(%arg0: i32, %arg1: i32, %arg2: i32) -> (i32, i32) {
    %c0_i32 = arith.constant 0 : i32
    return %arg0, %arg2 : i32, i32
  }
  func.func @transform_1(%arg0: i32, %arg1: i32, %arg2: i32) -> (i32, i32) {
    %c0_i32 = arith.constant 0 : i32
    return %arg2, %arg1 : i32, i32
  }
  func.func @transform_2(%arg0: i32, %arg1: i32, %arg2: i32) -> (i32, i32) {
    %c0_i32 = arith.constant 0 : i32
    %c0_i32_0 = arith.constant 0 : i32
    return %c0_i32, %arg1 : i32, i32
  }
  func.func @transform_3(%arg0: i32, %arg1: i32, %arg2: i32) -> (i32, i32) {
    %c0_i32 = arith.constant 0 : i32
    return %arg0, %arg1 : i32, i32
  }
}

</mosaic_0001>

<bundles_post_ra>
// kernel: tpu_custom_call.1
= control target key start
LH: loop header
LB: loop body
LE: loop exit
PB: predicated region body
PF: predicated region fallthrough
CT: control target
= control target key end

     0   :  { %8 = vsyncpa [#allocation3], 0  ;;  %s396_s0 = inlined_call_operand.hbm [shape: f32[8,128], index: 0, kind: input, shape index: {}]   ;;  %s397_s1 = inlined_call_operand.hbm [shape: f32[128,128], index: 1, kind: input, shape index: {}]   ;;  %s398_s2 = inlined_call_operand.vmem [shape: f32[1,128], index: 2, kind: input, shape index: {}]   ;;  %s399_s3 = inlined_call_operand.hbm [shape: f32[8,128], index: 3, kind: output, shape index: {}]  }
   0x1   :  { %9 = vsyncpa [#allocation6], 0 }
   0x2   :  { %10 = vsyncpa [#allocation4], 0  ;;  %s322_s12 = smov [#allocation2]   ;;  %s323_s14 = smov [#allocation5]  }
   0x3   :  { %s17_s13 = sshll.u32 %s322_s12, 4  ;;  %s26_s15 = sshll.u32 %s323_s14, 4  ;;  %s18_s13 = int_to_ptr.vmem [resolvable:$true] %s17_s13  ;;  %s350_s15 = int_to_ptr.vmem [resolvable:$true] %s26_s15 }
   0x4   :  { %s250_s18 = scalar_lea.hbm %s396_s0, 128 }
   0x5   :  { %p251_p0 = scmp.ne.s32.totalorder %s396_s0, %s250_s18  ;;  %p254_p1 = scmp.lt.u32.totalorder %s250_s18, %s396_s0 }
   0x7   :  { %p256_p2 = pnand %p254_p1, %p251_p0 }
   0x9   :  { %259 = shalt.err (!%p256_p2)
}
   0xa   :  { %s260_s23 = scalar_lea.vmem %s18_s13, 128  ;;  %p265_p4 = scmp.lt.s32.totalorder %s18_s13, %s18_s13 }
   0xb   :  { %p261_p3 = scmp.ne.s32.totalorder %s18_s13, %s260_s23  ;;  %p266_p5 = scmp.lt.s32.totalorder %s260_s23, %s260_s23 }
   0xd   :  { %p267_p6 = por %p266_p5, %p265_p4 }
   0xf   :  { %p268_p7 = pnand %p267_p6, %p261_p3 }
  0x11   :  { %271 = shalt.err (!%p268_p7)
}
  0x12   :  { %20 = dma.hbm_to_vmem [thread:$0]  %s396_s0, 128, %s18_s13, [#allocation3]  }
  0x13   :  { %s272_s28 = scalar_lea.hbm %s397_s1, 2048 }
  0x14   :  { %p273_p8 = scmp.ne.s32.totalorder %s397_s1, %s272_s28  ;;  %p276_p9 = scmp.lt.u32.totalorder %s272_s28, %s397_s1 }
  0x16   :  { %p278_p10 = pnand %p276_p9, %p273_p8 }
  0x18   :  { %281 = shalt.err (!%p278_p10)
}
  0x19   :  { %s282_s6 = scalar_lea.vmem %s350_s15, 2048  ;;  %p287_p12 = scmp.lt.s32.totalorder %s350_s15, %s350_s15 }
  0x1a   :  { %p283_p11 = scmp.ne.s32.totalorder %s350_s15, %s282_s6  ;;  %p288_p13 = scmp.lt.s32.totalorder %s282_s6, %s282_s6 }
  0x1c   :  { %p289_p0 = por %p288_p13, %p287_p12 }
  0x1e   :  { %p290_p1 = pnand %p289_p0, %p283_p11 }
  0x20   :  { %293 = shalt.err (!%p290_p1)
}
  0x21   :  { %s324_s0 = smov 128   ;;  %s325_s7 = smov 8  }
  0x22   :  { %32 = dma.hbm_to_vmem [thread:$0]  %s397_s1, 2048, %s350_s15, [#allocation6], %s324_s0, %s324_s0, %s325_s7  }
  0x23   :  { %316 = dma.done.wait [#allocation3], 128  }
  0x24   :  { %317 = vsyncadd [#allocation3], 4294967168 }
  0x25   :  { %318 = dma.done.wait [#allocation6], 2048  }
  0x26   :  { %319 = vsyncadd [#allocation6], 4294965248  ;;  %v326_v0 = vmov 0.0|0.0   ;;  %vm327_vm0 = vmmov 0   ;;  %v328_v1 = vmov 0.0   ;;  %v56_v2 = vld [vmem:[#allocation5] sm:$0xff]  ;;  %v48_v27 = vlaneseq }
  0x27   :  { %218 = vmatprep.subr.bf16.mxu0 %v326_v0  ;;  %215 = vmatprep.mubr.msk.f32.mxu0 %vm327_vm0, %v328_v1  ;;  %v57_v3 = vld [vmem:[#allocation5 + $0x8] sm:$0xff]  ;;  %v58_v4 = vld [vmem:[#allocation5 + $0x10] sm:$0xff]  ;;  %v59_v6 = vld [vmem:[#allocation5 + $0x18] sm:$0xff]  ;;  %s329_s11 = smov [#allocation7]  }
  0x28   :  { %v219_v5 = vpack.c.bf16 %v57_v3, %v56_v2  ;;  %v222_v7 = vpack.c.bf16 %v59_v6, %v58_v4  ;;  %v60_v8 = vld [vmem:[#allocation5 + $0x20] sm:$0xff]  ;;  %v61_v9 = vld [vmem:[#allocation5 + $0x28] sm:$0xff]  ;;  %v62_v11 = vld [vmem:[#allocation5 + $0x30] sm:$0xff]  ;;  %v49_v28 = vshrl.u32 %v48_v27, 7  ;;  %s156_s12 = sshll.u32 %s329_s11, 4  ;;  %s157_s12 = int_to_ptr.vmem [resolvable:$true] %s156_s12 }
  0x29   :  { %v225_v10 = vpack.c.bf16 %v61_v9, %v60_v8  ;;  %v63_v12 = vld [vmem:[#allocation5 + $0x38] sm:$0xff]  ;;  %v64_v14 = vld [vmem:[#allocation5 + $0x40] sm:$0xff]  ;;  %v65_v15 = vld [vmem:[#allocation5 + $0x48] sm:$0xff]  ;;  %s294_s13 = scalar_lea.vmem %s157_s12, 128  ;;  %p299_p3 = scmp.lt.s32.totalorder %s157_s12, %s157_s12 }
  0x2a   :  { %220 = vmatpush3.bf16.msra.mxu0 %v219_v5  ;;  %v228_v13 = vpack.c.bf16 %v63_v12, %v62_v11  ;;  %v231_v16 = vpack.c.bf16 %v65_v15, %v64_v14  ;;  %v66_v17 = vld [vmem:[#allocation5 + $0x50] sm:$0xff]  ;;  %v67_v18 = vld [vmem:[#allocation5 + $0x58] sm:$0xff]  ;;  %v68_v20 = vld [vmem:[#allocation5 + $0x60] sm:$0xff]  ;;  %v50_v31 = vsub.s32 0, %v49_v28  ;;  %p295_p2 = scmp.ne.s32.totalorder %s157_s12, %s294_s13  ;;  %p300_p4 = scmp.lt.s32.totalorder %s294_s13, %s294_s13 }
  0x2b   :  { %221 = vmatprep.subr.bf16.mxu0 %v326_v0  ;;  %v234_v19 = vpack.c.bf16 %v67_v18, %v66_v17  ;;  %v69_v21 = vld [vmem:[#allocation5 + $0x68] sm:$0xff]  ;;  %v70_v23 = vld [vmem:[#allocation5 + $0x70] sm:$0xff]  ;;  %v71_v24 = vld [vmem:[#allocation5 + $0x78] sm:$0xff] }
  0x2c   :  { %v237_v22 = vpack.c.bf16 %v69_v21, %v68_v20  ;;  %v240_v25 = vpack.c.bf16 %v71_v24, %v70_v23  ;;  %v55_v26 = vld [vmem:[#allocation2] sm:$0xff]  ;;  %p301_p5 = por %p300_p4, %p299_p3 }
  0x2d   :  { %v45_v29 = vld [vmem:[%s398_s2] sm:$0x1] }
  0x2e   :  { %223 = vmatpush3.bf16.msra.mxu0 %v222_v7  ;;  %v46_v30 = vadd.f32 1.0, %v45_v29  ;;  %p302_p6 = pnand %p301_p5, %p295_p2 }
  0x2f   :  { %224 = vmatprep.subr.bf16.mxu0 %v326_v0 }
  0x30   :  { %v51_v32 = vrot.slane %v46_v30, %v50_v31 }
  0x32   :  { %226 = vmatpush3.bf16.msra.mxu0 %v225_v10 }
  0x33   :  { %227 = vmatprep.subr.bf16.mxu0 %v326_v0 }
  0x36   :  { %229 = vmatpush3.bf16.msra.mxu0 %v228_v13 }
  0x37   :  { %230 = vmatprep.subr.bf16.mxu0 %v326_v0 }
  0x3a   :  { %232 = vmatpush3.bf16.msra.mxu0 %v231_v16 }
  0x3b   :  { %233 = vmatprep.subr.bf16.mxu0 %v326_v0 }
  0x3e   :  { %235 = vmatpush3.bf16.msra.mxu0 %v234_v19 }
  0x3f   :  { %236 = vmatprep.subr.bf16.mxu0 %v326_v0 }
  0x42   :  { %238 = vmatpush3.bf16.msra.mxu0 %v237_v22 }
  0x43   :  { %239 = vmatprep.subr.bf16.mxu0 %v326_v0 }
  0x46   :  { %241 = vmatpush3.bf16.msra.mxu0 %v240_v25 }
  0x49   :  { %216 = vmatmul.mubr.f32.vlgmr.msra.gmra.mrb[0].mxu0 %v55_v26 }
 0x11c   :  { %v138_v33 = vpop.f32.mrb[0].mxu0 }
 0x11d   :  { %v142_v34 = vadd.f32 %v138_v33, %v51_v32  ;;  %v217_v35 = vpop.f32.mrb[1].mxu0 }
 0x11f   :  { %v148_v36 = vmul.f32 0.5, %v142_v34 }
 0x121   :  { %149 = vst [vmem:[#allocation7] sm:$0xff] %v148_v36 }
 0x122   :  { %305 = shalt.err (!%p302_p6)
}
 0x123   :  { %s306_s15 = scalar_lea.hbm %s399_s3, 128 }
 0x124   :  { %p307_p7 = scmp.ne.s32.totalorder %s399_s3, %s306_s15  ;;  %p310_p8 = scmp.lt.u32.totalorder %s306_s15, %s399_s3 }
 0x126   :  { %p312_p9 = pnand %p310_p8, %p307_p7 }
 0x128   :  { %315 = shalt.err (!%p312_p9)
}
 0x129   :  { %159 = dma.vmem_to_hbm [thread:$0]  %s157_s12, 128, %s399_s3, [#allocation4]  }
 0x12a   :  { %320 = dma.done.wait [#allocation4], 128  }
 0x12b   :  { %321 = vsyncadd [#allocation4], 4294967168 }
 0x12c   :  { %163 = vsyncpa [#allocation3], 1 }
 0x12d   :  { %164 = vsyncpa [#allocation6], 1 }
 0x12e   :  { %165 = vsyncpa [#allocation4], 1 }

</bundles_post_ra>
